<compile_context>
chip_gen: v6e
topology: v6e:2x2x1
jax: 0.10.0
libtpu: 0.0.40
codegen_flags: <defaults>
</compile_context>

<pallas_src>
import functools
import math

import numpy as np
import jax
import jax.numpy as jnp
from jax.experimental import pallas as pl
from jax.experimental.pallas import tpu as pltpu

LANES = 128
SUBLANES = 8
DEFAULT_BLOCK_ROWS = 4096   # (4096, 128) f32 block = 2 MiB; sweep to 8192 on v7x/v6e
NCORES = 2                  # leading "parallel" axis (both TCs on megacore parts)

# Clamp constants.  The log-space bounds are derived from the exact f32 values
# the PyTorch reference produces (clamp p in f32, subtract, then log), so the
# saturated tails match the original module bit-for-bit-ish.
_P_LO = np.float32(1e-6)
_P_HI = np.float32(1.0 - 1e-6)
_LOGP_LO = float(np.log(_P_LO))                      # log(clip lo)
_LOGP_HI = float(np.log(_P_HI))                      # log(clip hi)
_LOG1MP_LO = float(np.log(np.float32(1.0) - _P_HI))  # log(1 - clip hi), as f32 does it
_LOG1MP_HI = float(np.log(np.float32(1.0) - _P_LO))  # log(1 - clip lo)


def _focal_loss_kernel(x_ref, t_ref, o_ref, acc_ref, *,
                       gamma, scale, n_valid, block_rows, steps_per_core):
    c = pl.program_id(0)     # parallel (core) axis
    i = pl.program_id(1)     # sequential reduction axis

    @pl.when(i == 0)
    def _():
        acc_ref[...] = jnp.zeros_like(acc_ref)

    x = x_ref[...].astype(jnp.float32)
    t = t_ref[...].astype(jnp.float32)

    # --- shared-exp sigmoid / BCE (EUP: 1 exp + 1 log + 1 div per element) ---
    e = jnp.exp(-jnp.abs(x))          # exp(-|x|) in (0, 1]; never overflows
    el = jnp.log(1.0 + e)             # ~log1p(e); clamps below absorb the ulp loss
    # log(sigmoid(x)) = min(x,0) - el ;  log(1 - sigmoid(x)) = -max(x,0) - el.
    # Clamping in log space is equivalent to clamping p (log is monotone).
    log_p = jnp.clip(jnp.minimum(x, 0.0) - el, _LOGP_LO, _LOGP_HI)
    log_1mp = jnp.clip(-jnp.maximum(x, 0.0) - el, _LOG1MP_LO, _LOG1MP_HI)

    # BCE_loss = F.binary_cross_entropy(clamp(sigmoid(x)), t, reduction='none')
    bce = -(t * log_p + (1.0 - t) * log_1mp)

    # p = clamp(sigmoid(x)), overflow-safe; exact divide keeps the focal term
    # within a few ulp of the reference (approx reciprocal would not).
    inv = 1.0 / (1.0 + e)
    p = jnp.clip(jnp.where(x >= 0.0, inv, e * inv), float(_P_LO), float(_P_HI))

    # pt = where(t == 1, p, 1 - p);  focal = (1 - pt) ** gamma.
    # (Exact `t == 1` keeps the original module's semantics even for soft
    #  labels; jnp.abs(p - t) would save one VALU op but is binary-only.)
    one_m_pt = jnp.where(t == 1.0, 1.0 - p, p)
    g = float(gamma)
    if g == int(g) and 0 <= int(g) <= 4:
        gi = int(g)   # small-integer gamma: unrolled multiplies, no EUP pow
        focal = jnp.ones_like(one_m_pt) if gi == 0 else one_m_pt
        for _ in range(max(gi - 1, 0)):
            focal = focal * one_m_pt
    else:
        focal = one_m_pt ** g

    loss = focal * bce                 # alpha is folded into `scale`

    # --- gated validity mask -------------------------------------------------
    lb = c * steps_per_core + i                      # logical block index
    block_end = (lb + 1) * (block_rows * LANES)
    is_full = block_end <= n_valid                   # fully-interior block?

    @pl.when(is_full)
    def _():  # interior blocks: no iota / compare / select work at all
        acc_ref[...] += loss.reshape(-1, SUBLANES, LANES).sum(axis=0)

    @pl.when(jnp.logical_not(is_full))
    def _():  # ragged tail + clamped duplicate blocks: flat-index mask
        row = jax.lax.broadcasted_iota(jnp.int32, loss.shape, 0)
        lane = jax.lax.broadcasted_iota(jnp.int32, loss.shape, 1)
        flat = (lb * block_rows + row) * LANES + lane
        masked = jnp.where(flat < n_valid, loss, 0.0)
        acc_ref[...] += masked.reshape(-1, SUBLANES, LANES).sum(axis=0)

    @pl.when(i == pl.num_programs(1) - 1)
    def _():
        o_ref[...] = acc_ref[...] * scale


def focal_loss(inputs, targets, alpha=0.8, gamma=2.0, reduction="mean",
               block_rows=DEFAULT_BLOCK_ROWS):
    """Pallas FocalLoss.forward (reduction: 'mean' or 'sum').

    Notes:
      * For best HBM efficiency pass binary targets as int8/bool/bf16 (do not
        cast in this wrapper -- that would add a full extra HBM pass).  Narrow
        target dtypes are exact only for binary {0, 1} labels; pass f32
        targets if you use soft labels.
      * block_rows: 4096 is safe on v5e/v6e/v7x; sweep 8192 on v7x (and v6e)
        and set pltpu.CompilerParams(vmem_limit_bytes=...) if both inputs are
        streamed as f32 on v5e.
    """
    assert reduction in ("mean", "sum")

    n = int(inputs.size)
    x = inputs.reshape(-1)      # keep caller dtype; cast after the DMA in-kernel
    t = targets.reshape(-1)

    # Rows must be a multiple of the sublane packing of the narrowest streamed
    # dtype (f32: 8, bf16: 16, int8/bool: 32).  Aligned inputs skip the pad copy.
    itemsize = min(jnp.dtype(x.dtype).itemsize, jnp.dtype(t.dtype).itemsize)
    row_mult = max(SUBLANES, SUBLANES * (4 // max(itemsize, 1)))
    pad = (-n) % (row_mult * LANES)
    if pad:
        x = jnp.pad(x, (0, pad))
        t = jnp.pad(t, (0, pad))

    rows = (n + pad) // LANES
    x = x.reshape(rows, LANES)
    t = t.reshape(rows, LANES)

    block_rows = min(block_rows, rows)
    total_blocks = pl.cdiv(rows, block_rows)
    steps_per_core = pl.cdiv(total_blocks, NCORES)

    # The tail/duplicate-block mask uses an int32 flat index; guard overflow.
    assert NCORES * steps_per_core * block_rows * LANES < 2**31, (
        "int32 flat-index mask would overflow; use a per-block remaining-rows "
        "mask for inputs this large")

    # alpha folded into the finalize scale (numerically identical, saves a mul).
    scale = float(alpha) * ((1.0 / n) if reduction == "mean" else 1.0)

    kernel = functools.partial(
        _focal_loss_kernel,
        gamma=float(gamma), scale=scale, n_valid=n,
        block_rows=block_rows, steps_per_core=steps_per_core)

    # Clamp out-of-range logical blocks onto the last real block; the gated
    # in-kernel mask zeroes their contribution.
    idx = lambda c, i: (jnp.minimum(c * steps_per_core + i, total_blocks - 1), 0)

    partials = pl.pallas_call(
        kernel,
        out_shape=jax.ShapeDtypeStruct((NCORES * SUBLANES, LANES), jnp.float32),
        grid_spec=pltpu.PrefetchScalarGridSpec(
            num_scalar_prefetch=0,
            grid=(NCORES, steps_per_core),
            in_specs=[
                # If a trace shows exposed DMA (most likely on v7x), sweep
                # pipeline_mode=pl.Buffered(3) on these two specs.
                pl.BlockSpec((block_rows, LANES), idx),
                pl.BlockSpec((block_rows, LANES), idx),
            ],
            out_specs=pl.BlockSpec((SUBLANES, LANES), lambda c, i: (c, 0)),
            scratch_shapes=[pltpu.VMEM((SUBLANES, LANES), jnp.float32)],
        ),
        compiler_params=pltpu.CompilerParams(
            dimension_semantics=("parallel", "arbitrary")),
    )(x, t)

    # Tiny final reduction of the per-core (8, 128) partial sums.
    return jnp.sum(partials)


def _focal_loss_ref(inputs, targets, alpha=0.8, gamma=2.0):
    p = jnp.clip(jax.nn.sigmoid(inputs.astype(jnp.float32)), 1e-6, 1.0 - 1e-6)
    t = targets.astype(jnp.float32)
    bce = -(t * jnp.log(p) + (1.0 - t) * jnp.log(1.0 - p))
    pt = jnp.where(t == 1.0, p, 1.0 - p)
    return jnp.mean(alpha * (1.0 - pt) ** gamma * bce)


if __name__ == "__main__":
    key = jax.random.PRNGKey(0)
    k1, k2 = jax.random.split(key)

    # NCHW logits and binary targets, like the wildfire segmentation use-case.
    x = jax.random.normal(k1, (2, 4, 16, 16), dtype=jnp.float32) * 2.0
    t_f32 = (jax.random.uniform(k2, (2, 4, 16, 16)) < 0.3).astype(jnp.float32)

    # Binary targets: stream them as int8 (1 B/elem) -- exact, 4x fewer target bytes.
    out = focal_loss(x, t_f32.astype(jnp.int8), alpha=0.8, gamma=2.0,
                     reduction="mean")
    out = jax.block_until_ready(out)

    ref = _focal_loss_ref(x, t_f32)
    assert jnp.allclose(out, ref, rtol=2e-5, atol=1e-6), (out, ref)

    print("KERNEL_OK")
</pallas_src>

<mosaic_0001>
module attributes {stable_mosaic.version = 11 : i64} {
  func.func @_focal_loss_kernel(%arg0: i32, %arg1: i32, %arg2: memref<32x128xf32, #tpu.memory_space<vmem>>, %arg3: memref<32x128xi8, #tpu.memory_space<vmem>>, %arg4: memref<8x128xf32, #tpu.memory_space<vmem>>, %arg5: memref<8x128xf32, #tpu.memory_space<vmem>>) attributes {dimension_semantics = [#tpu.dimension_semantics<parallel>, #tpu.dimension_semantics<arbitrary>], iteration_bounds = array<i64: 2, 1>, scalar_prefetch = 0 : i64, scratch_operands = 1 : i64, tpu.core_type = #tpu.core_type<tc>, window_params = [{transform_indices = @transform_0, window_bounds = array<i64: 32, 128>}, {transform_indices = @transform_1, window_bounds = array<i64: 32, 128>}, {transform_indices = @transform_2, window_bounds = array<i64: 8, 128>}]} {
    %c0_i32 = arith.constant 0 : i32
    %0 = arith.cmpi eq, %arg1, %c0_i32 : i32
    %1 = arith.extui %0 : i1 to i32
    %c0_i32_0 = arith.constant 0 : i32
    %2 = arith.cmpi ne, %1, %c0_i32_0 : i32
    scf.if %2 {
      %cst_26 = arith.constant 0.000000e+00 : f32
      %68 = vector.broadcast %cst_26 : f32 to vector<8x128xf32>
      %c0_27 = arith.constant 0 : index
      %c0_28 = arith.constant 0 : index
      %69 = vector.load %arg5[%c0_27, %c0_28] : memref<8x128xf32, #tpu.memory_space<vmem>>, vector<8x128xf32>
      tpu.vector_store %arg5[%c0_27, %c0_28], %68 {strides = array<i32>} : memref<8x128xf32, #tpu.memory_space<vmem>>, vector<8x128xf32>,
    } else {
    }
    %c0 = arith.constant 0 : index
    %c0_1 = arith.constant 0 : index
    %3 = vector.load %arg2[%c0, %c0_1] : memref<32x128xf32, #tpu.memory_space<vmem>>, vector<32x128xf32>
    %c0_2 = arith.constant 0 : index
    %c0_3 = arith.constant 0 : index
    %4 = vector.load %arg3[%c0_2, %c0_3] : memref<32x128xi8, #tpu.memory_space<vmem>>, vector<32x128xi8>
    %5 = arith.sitofp %4 : vector<32x128xi8> to vector<32x128xf32>
    %6 = math.absf %3 : vector<32x128xf32>
    %cst = arith.constant 0.000000e+00 : f32
    %7 = vector.broadcast %cst : f32 to vector<32x128xf32>
    %8 = arith.subf %7, %6 : vector<32x128xf32>
    %9 = math.exp %8 : vector<32x128xf32>
    %cst_4 = arith.constant 1.000000e+00 : f32
    %10 = vector.broadcast %cst_4 : f32 to vector<32x128xf32>
    %11 = arith.addf %10, %9 : vector<32x128xf32>
    %12 = math.log %11 : vector<32x128xf32>
    %cst_5 = arith.constant 0.000000e+00 : f32
    %13 = vector.broadcast %cst_5 : f32 to vector<32x128xf32>
    %14 = arith.minimumf %3, %13 : vector<32x128xf32>
    %15 = arith.subf %14, %12 : vector<32x128xf32>
    %cst_6 = arith.constant -13.8155107 : f32
    %cst_7 = arith.constant -1.01327942E-6 : f32
    %16 = vector.broadcast %cst_6 : f32 to vector<32x128xf32>
    %17 = arith.maximumf %16, %15 : vector<32x128xf32>
    %18 = vector.broadcast %cst_7 : f32 to vector<32x128xf32>
    %19 = arith.minimumf %18, %17 : vector<32x128xf32>
    %cst_8 = arith.constant 0.000000e+00 : f32
    %20 = vector.broadcast %cst_8 : f32 to vector<32x128xf32>
    %21 = arith.maximumf %3, %20 : vector<32x128xf32>
    %cst_9 = arith.constant 0.000000e+00 : f32
    %22 = vector.broadcast %cst_9 : f32 to vector<32x128xf32>
    %23 = arith.subf %22, %21 : vector<32x128xf32>
    %24 = arith.subf %23, %12 : vector<32x128xf32>
    %cst_10 = arith.constant -13.8023186 : f32
    %cst_11 = arith.constant -1.01327942E-6 : f32
    %25 = vector.broadcast %cst_10 : f32 to vector<32x128xf32>
    %26 = arith.maximumf %25, %24 : vector<32x128xf32>
    %27 = vector.broadcast %cst_11 : f32 to vector<32x128xf32>
    %28 = arith.minimumf %27, %26 : vector<32x128xf32>
    %29 = arith.mulf %5, %19 : vector<32x128xf32>
    %cst_12 = arith.constant 1.000000e+00 : f32
    %30 = vector.broadcast %cst_12 : f32 to vector<32x128xf32>
    %31 = arith.subf %30, %5 : vector<32x128xf32>
    %32 = arith.mulf %31, %28 : vector<32x128xf32>
    %33 = arith.addf %29, %32 : vector<32x128xf32>
    %cst_13 = arith.constant 0.000000e+00 : f32
    %34 = vector.broadcast %cst_13 : f32 to vector<32x128xf32>
    %35 = arith.subf %34, %33 : vector<32x128xf32>
    %cst_14 = arith.constant 1.000000e+00 : f32
    %36 = vector.broadcast %cst_14 : f32 to vector<32x128xf32>
    %37 = arith.addf %36, %9 : vector<32x128xf32>
    %cst_15 = arith.constant 1.000000e+00 : f32
    %38 = vector.broadcast %cst_15 : f32 to vector<32x128xf32>
    %39 = arith.divf %38, %37 : vector<32x128xf32>
    %cst_16 = arith.constant 0.000000e+00 : f32
    %40 = vector.broadcast %cst_16 : f32 to vector<32x128xf32>
    %41 = arith.cmpf oge, %3, %40 : vector<32x128xf32>
    %42 = arith.mulf %9, %39 : vector<32x128xf32>
    %43 = arith.select %41, %39, %42 : vector<32x128xi1>, vector<32x128xf32>
    %cst_17 = arith.constant 9.99999997E-7 : f32
    %cst_18 = arith.constant 0.999998986 : f32
    %44 = vector.broadcast %cst_17 : f32 to vector<32x128xf32>
    %45 = arith.maximumf %44, %43 : vector<32x128xf32>
    %46 = vector.broadcast %cst_18 : f32 to vector<32x128xf32>
    %47 = arith.minimumf %46, %45 : vector<32x128xf32>
    %cst_19 = arith.constant 1.000000e+00 : f32
    %48 = vector.broadcast %cst_19 : f32 to vector<32x128xf32>
    %49 = arith.cmpf oeq, %5, %48 : vector<32x128xf32>
    %cst_20 = arith.constant 1.000000e+00 : f32
    %50 = vector.broadcast %cst_20 : f32 to vector<32x128xf32>
    %51 = arith.subf %50, %47 : vector<32x128xf32>
    %52 = arith.select %49, %51, %47 : vector<32x128xi1>, vector<32x128xf32>
    %53 = arith.mulf %52, %52 : vector<32x128xf32>
    %54 = arith.mulf %53, %35 : vector<32x128xf32>
    %c1_i32 = arith.constant 1 : i32
    %55 = arith.muli %arg0, %c1_i32 : i32
    %56 = arith.addi %55, %arg1 : i32
    %c1_i32_21 = arith.constant 1 : i32
    %57 = arith.addi %56, %c1_i32_21 : i32
    %c4096_i32 = arith.constant 4096 : i32
    %58 = arith.muli %57, %c4096_i32 : i32
    %c2048_i32 = arith.constant 2048 : i32
    %59 = arith.cmpi sle, %58, %c2048_i32 : i32
    %60 = arith.extui %59 : i1 to i32
    %c0_i32_22 = arith.constant 0 : i32
    %61 = arith.cmpi ne, %60, %c0_i32_22 : i32
    scf.if %61 {
      %c0_26 = arith.constant 0 : index
      %c0_27 = arith.constant 0 : index
      %68 = vector.load %arg5[%c0_26, %c0_27] : memref<8x128xf32, #tpu.memory_space<vmem>>, vector<8x128xf32>
      %69 = vector.shape_cast %54 : vector<32x128xf32> to vector<4x8x128xf32>
      %cst_28 = arith.constant dense<0.000000e+00> : vector<8x128xf32>
      %70 = vector.multi_reduction <add>, %69, %cst_28 [0] : vector<4x8x128xf32> to vector<8x128xf32>
      %71 = arith.addf %68, %70 : vector<8x128xf32>
      %c0_29 = arith.constant 0 : index
      %c0_30 = arith.constant 0 : index
      %72 = vector.load %arg5[%c0_29, %c0_30] : memref<8x128xf32, #tpu.memory_space<vmem>>, vector<8x128xf32>
      tpu.vector_store %arg5[%c0_29, %c0_30], %71 {strides = array<i32>} : memref<8x128xf32, #tpu.memory_space<vmem>>, vector<8x128xf32>,
    } else {
    }
    %true = arith.constant true
    %62 = arith.xori %59, %true : i1
    %63 = arith.extui %62 : i1 to i32
    %c0_i32_23 = arith.constant 0 : i32
    %64 = arith.cmpi ne, %63, %c0_i32_23 : i32
    scf.if %64 {
      %68 = tpu.iota {dimensions = array<i32: 0>} : vector<32x128xi32>
      %69 = tpu.iota {dimensions = array<i32: 1>} : vector<32x128xi32>
      %c32_i32 = arith.constant 32 : i32
      %70 = arith.muli %56, %c32_i32 : i32
      %71 = vector.broadcast %70 : i32 to vector<32x128xi32>
      %72 = arith.addi %71, %68 : vector<32x128xi32>
      %c128_i32 = arith.constant 128 : i32
      %73 = vector.broadcast %c128_i32 : i32 to vector<32x128xi32>
      %74 = arith.muli %72, %73 : vector<32x128xi32>
      %75 = arith.addi %74, %69 : vector<32x128xi32>
      %c2048_i32_26 = arith.constant 2048 : i32
      %76 = vector.broadcast %c2048_i32_26 : i32 to vector<32x128xi32>
      %77 = arith.cmpi slt, %75, %76 : vector<32x128xi32>
      %cst_27 = arith.constant 0.000000e+00 : f32
      %78 = vector.broadcast %cst_27 : f32 to vector<32x128xf32>
      %79 = arith.select %77, %54, %78 : vector<32x128xi1>, vector<32x128xf32>
      %c0_28 = arith.constant 0 : index
      %c0_29 = arith.constant 0 : index
      %80 = vector.load %arg5[%c0_28, %c0_29] : memref<8x128xf32, #tpu.memory_space<vmem>>, vector<8x128xf32>
      %81 = vector.shape_cast %79 : vector<32x128xf32> to vector<4x8x128xf32>
      %cst_30 = arith.constant dense<0.000000e+00> : vector<8x128xf32>
      %82 = vector.multi_reduction <add>, %81, %cst_30 [0] : vector<4x8x128xf32> to vector<8x128xf32>
      %83 = arith.addf %80, %82 : vector<8x128xf32>
      %c0_31 = arith.constant 0 : index
      %c0_32 = arith.constant 0 : index
      %84 = vector.load %arg5[%c0_31, %c0_32] : memref<8x128xf32, #tpu.memory_space<vmem>>, vector<8x128xf32>
      tpu.vector_store %arg5[%c0_31, %c0_32], %83 {strides = array<i32>} : memref<8x128xf32, #tpu.memory_space<vmem>>, vector<8x128xf32>,
    } else {
    }
    %c0_i32_24 = arith.constant 0 : i32
    %65 = arith.cmpi eq, %arg1, %c0_i32_24 : i32
    %66 = arith.extui %65 : i1 to i32
    %c0_i32_25 = arith.constant 0 : i32
    %67 = arith.cmpi ne, %66, %c0_i32_25 : i32
    scf.if %67 {
      %c0_26 = arith.constant 0 : index
      %c0_27 = arith.constant 0 : index
      %68 = vector.load %arg5[%c0_26, %c0_27] : memref<8x128xf32, #tpu.memory_space<vmem>>, vector<8x128xf32>
      %cst_28 = arith.constant 3.906250e-04 : f32
      %69 = vector.broadcast %cst_28 : f32 to vector<8x128xf32>
      %70 = arith.mulf %68, %69 : vector<8x128xf32>
      %c0_29 = arith.constant 0 : index
      %c0_30 = arith.constant 0 : index
      %71 = vector.load %arg4[%c0_29, %c0_30] : memref<8x128xf32, #tpu.memory_space<vmem>>, vector<8x128xf32>
      tpu.vector_store %arg4[%c0_29, %c0_30], %70 {strides = array<i32>} : memref<8x128xf32, #tpu.memory_space<vmem>>, vector<8x128xf32>,
    } else {
    }
    return
  }
  func.func @transform_0(%arg0: i32, %arg1: i32) -> (i32, i32) {
    %c1_i32 = arith.constant 1 : i32
    %0 = arith.muli %arg0, %c1_i32 : i32
    %1 = arith.addi %0, %arg1 : i32
    %c0_i32 = arith.constant 0 : i32
    %2 = arith.minsi %1, %c0_i32 : i32
    %c0_i32_0 = arith.constant 0 : i32
    %c0_i32_1 = arith.constant 0 : i32
    return %2, %c0_i32_0 : i32, i32
  }
  func.func @transform_1(%arg0: i32, %arg1: i32) -> (i32, i32) {
    %c1_i32 = arith.constant 1 : i32
    %0 = arith.muli %arg0, %c1_i32 : i32
    %1 = arith.addi %0, %arg1 : i32
    %c0_i32 = arith.constant 0 : i32
    %2 = arith.minsi %1, %c0_i32 : i32
    %c0_i32_0 = arith.constant 0 : i32
    %c0_i32_1 = arith.constant 0 : i32
    return %2, %c0_i32_0 : i32, i32
  }
  func.func @transform_2(%arg0: i32, %arg1: i32) -> (i32, i32) {
    %c0_i32 = arith.constant 0 : i32
    %c0_i32_0 = arith.constant 0 : i32
    return %arg0, %c0_i32 : i32, i32
  }
}

</mosaic_0001>

<bundles_post_ra>
// kernel: tpu_custom_call.1
= control target key start
LH: loop header
LB: loop body
LE: loop exit
PB: predicated region body
PF: predicated region fallthrough
CT: control target
= control target key end

     0   :  { %7 = vsyncpa [#allocation4], 0  ;;  %s1157_s0 = inlined_call_operand.hbm [shape: f32[32,128], index: 0, kind: input, shape index: {}]   ;;  %s1158_s1 = inlined_call_operand.hbm [shape: s8[32,128], index: 1, kind: input, shape index: {}]   ;;  %s1159_s2 = inlined_call_operand.hbm [shape: f32[16,128], index: 2, kind: output, shape index: {}]  }
   0x1   :  { %9 = vsyncpa [#allocation4 + $0x1], 0 }
   0x2   :  { %10 = vsyncpa [#allocation7], 0 }
   0x3   :  { %12 = vsyncpa [#allocation7 + $0x1], 0 }
   0x4   :  { %13 = vsyncpa [#allocation5], 0 }
   0x5   :  { %15 = vsyncpa [#allocation5 + $0x1], 0  ;;  %s885_s9 = smov 0   ;;  %s887_s10 = smov 0  }
   0x6   :  { %s889_s11 = smov 0   ;;  %s891_s12 = smov 0  }
   0x7   :  { %s893_s13 = smov 0   ;;  %s895_s14 = smov 0  }
   0x8   :  { %s897_s15 = smov 0   ;;  %s899_s16 = smov 0  }
   0x9 LB: > { %s559_s17 = sadd.s32 4294967295, %s862_s16   ;;  %s560_s18 = sadd.s32 4294967294, %s862_s16   ;;  %s862_s16 = sphi %s899_s16, %s21_s16   ;;  %s858_s15 = sphi %s897_s15, %s1178_s15   ;;  %s854_s14 = sphi %s895_s14, %s1177_s14   ;;  %s850_s13 = sphi %s893_s13, %s1147_s13   ;;  %s846_s12 = sphi %s891_s12, %s1176_s12   ;;  %s842_s11 = sphi %s889_s11, %s1175_s11   ;;  %s838_s10 = sphi %s887_s10, %s1174_s10   ;;  %s834_s9 = sphi %s885_s9, %s1173_s9  }
   0xa   : > { %s33_s19 = sadd.s32 1, %s858_s15  ;;  %p831_p1 = scmp.ne.s32.totalorder %s850_s13, 0 }
   0xb   : > { %p35_p0 = scmp.ge.s32.totalorder %s33_s19, 2  ;;  %p54_p2 = scmp.eq.s32.totalorder %s862_s16, 0 }
   0xc   : > { %p59_p3 = scmp.ne.s32.totalorder %s850_s13, %s846_s12  ;;  %p60_p5 = scmp.eq.s32.totalorder %s559_s17, 0 }
   0xd   : > { %s1180_s19 = smov (%p35_p0, %s33_s19), 0  ;;  %p931_p4 = por %p831_p1, %p54_p2 }
   0xe   : > { %p935_p6 = por %p60_p5, %p59_p3  ;;  %s101_s22 = ssub.s32 %s858_s15, %s1180_s19 }
   0xf   : > { %p102_p7 = scmp.eq.s32.totalorder %s101_s22, 0  ;;  %s104_s23 = sadd.s32 1, %s842_s11 }
  0x10   : > { %s1163_s21 = scalar_select %p935_p6, 1, 0 }
  0x11   : > { %s943_s24 = scalar_select %p102_p7, %s842_s11, %s104_s23  }
  0x12   : > { %p114_p8 = scmp.ne.s32.totalorder %s842_s11, %s838_s10  ;;  %p115_p9 = scmp.eq.s32.totalorder %s559_s17, 1 }
  0x13   : > { %p120_p10 = scmp.ne.s32.totalorder %s838_s10, %s834_s9  ;;  %p121_p11 = scmp.eq.s32.totalorder %s560_s18, 1 }
  0x14   : > { %p949_p12 = por %p115_p9, %p114_p8  ;;  %p600_p1 = scmp.lt.s32.totalorder %s862_s16, 2 }
  0x15   : > { %p954_p0 = por %p121_p11, %p120_p10  ;;  %s864_s27 = smov [#allocation3]  }
  0x16   : > { %s1164_s25 = scalar_select %p949_p12, 1, 0 }
  0x17   : > { %s1165_s26 = scalar_select %p954_p0, 1, 0 }
  0x18   : > { %s155_s28 = sshll.u32 %s864_s27, 4  ;;  %p961_p2 = pnand %p600_p1, %p931_p4  ;;  %s156_s28 = int_to_ptr.vmem [resolvable:$true] %s155_s28 }
  0x19   : > { %s701_s4 = scalar_lea.hbm %s1157_s0, 512 }
  0x1a   : > { %p702_p3 = scmp.ne.s32.totalorder %s1157_s0, %s701_s4  ;;  %p703_p5 = pneg %p961_p2 }
  0x1b   : > { %p708_p8 = scmp.lt.s32.totalorder %s701_s4, %s701_s4 }
  0x1c   : > { %p704_p7 = pnand %p703_p5, %p702_p3 }
  0x1e   : > { %p705_p4 = pneg %p704_p7 }
  0x20   : > { %p710_p9 = pnand %p708_p8, %p705_p4 }
  0x22   : > { %713 = shalt.err (!%p710_p9)
}
  0x23   : > { %s714_s7 = scalar_lea.vmem %s156_s28, 512  ;;  %s721_s8 = scalar_lea.vmem %s156_s28, 1024 }
  0x24   : > { %p715_p10 = scmp.ne.s32.totalorder %s156_s28, %s714_s7  ;;  %p722_p13 = scmp.lt.s32.totalorder %s156_s28, %s156_s28 }
  0x25   : > { %p723_p0 = scmp.lt.s32.totalorder %s721_s8, %s714_s7 }
  0x26   : > { %p717_p11 = pnand %p715_p10, %p703_p5 }
  0x27   : > { %p724_p12 = por %p723_p0, %p722_p13 }
  0x28   : > { %p718_p1 = pneg %p717_p11 }
  0x2a   : > { %p725_p6 = pnand %p724_p12, %p718_p1 }
  0x2c   : > { %728 = shalt.err (!%p725_p6)
}
  0x2d   : > { %s865_s12 = smov 128   ;;  %s866_s17 = smov 8  }
  0x2e   : > { %592 = dma.hbm_to_vmem [thread:$0]  (!%p961_p2), %s1157_s0, 512, %s156_s28, [#allocation4], %s865_s12, %s865_s12, %s866_s17  }
  0x2f   : > { %p568_p3 = scmp.ge.s32.totalorder %s862_s16, 1  ;;  %p184_p7 = scmp.lt.s32.totalorder %s862_s16, 3 }
  0x30   : > { %s867_s23 = smov [#allocation6]   ;;  %s729_s4 = scalar_lea.hbm %s1158_s1, 128 }
  0x31   : > { %p986_p4 = pnand %p568_p3, %p184_p7  ;;  %s179_s27 = sshll.u32 %s867_s23, 4  ;;  %s180_s27 = int_to_ptr.vmem [resolvable:$true] %s179_s27 }
  0x32   : > { %p730_p6 = scmp.ne.s32.totalorder %s1158_s1, %s729_s4  ;;  %p736_p0 = scmp.lt.s32.totalorder %s729_s4, %s729_s4 }
  0x33   : > { %s1167_s22 = scalar_select %p986_p4, 1, 0 }
  0x34   : > { %p732_p12 = pnand %p730_p6, %p703_p5 }
  0x36   : > { %p733_p13 = pneg %p732_p12 }
  0x38   : > { %p738_p8 = pnand %p736_p0, %p733_p13 }
  0x3a   : > { %741 = shalt.err (!%p738_p8)
}
  0x3b   : > { %s742_s28 = scalar_lea.vmem %s180_s27, 128  ;;  %s749_s7 = scalar_lea.vmem %s180_s27, 256 }
  0x3c   : > { %p743_p9 = scmp.ne.s32.totalorder %s180_s27, %s742_s28  ;;  %p750_p1 = scmp.lt.s32.totalorder %s180_s27, %s180_s27 }
  0x3d   : > { %p751_p3 = scmp.lt.s32.totalorder %s749_s7, %s742_s28 }
  0x3e   : > { %p745_p10 = pnand %p743_p9, %p703_p5 }
  0x3f   : > { %p752_p7 = por %p751_p3, %p750_p1 }
  0x40   : > { %p746_p11 = pneg %p745_p10 }
  0x42   : > { %p753_p4 = pnand %p752_p7, %p746_p11 }
  0x44   : > { %756 = shalt.err (!%p753_p4)
}
  0x45   : > { %595 = dma.hbm_to_vmem [thread:$0]  (!%p961_p2), %s1158_s1, 128, %s180_s27, [#allocation7]  }
  0x46   : > { %p1168_p6 = scmp.ne.s32.totalorder %s1167_s22, 0 }
  0x47   : > { %s190_s17 = sand.u32 (!%p1168_p6), 1, %s850_s13   ;;  %p1169_p5 = scmp.ne.s32.totalorder (!%p1168_p6), %s1163_s21, 0 }
  0x48   : > { %188 = sbr.rel (%p1168_p6) target bundleno = 206 (0xce), region = 28  ;;  %s569_s18 = sshll.u32 (!%p1168_p6), %s190_s17, 5 }
  0x49   : > { %s191_s20 = scalar_lea.sflag (!%p1168_p6), [#allocation4], %s190_s17  ;;  %s194_s23 = scalar_lea.vmem (!%p1168_p6), [#allocation3], %s569_s18 }
  0x4d   : > { %820 = dma.done.wait (%p1169_p5), %s191_s20, 512  }
  0x4e   : > { %822 = vsyncadd (%p1169_p5), %s191_s20, 4294966784  ;;  %s570_s29 = sshll.u32 %s190_s17, 3  ;;  %s200_s30 = scalar_lea.sflag [#allocation7], %s190_s17 }
  0x4f   : > { %s1014_s3 = scalar_lea.vmem [#allocation6], %s570_s29 }
  0x50   : > { %824 = dma.done.wait (%p1169_p5), %s200_s30, 128  }
  0x51   : > { %826 = vsyncadd (%p1169_p5), %s200_s30, 4294967168  ;;  %s226_s22 = sand.u32 1, %s838_s10   ;;  %s581_s27 = sshll.u32 %s854_s14, 12  ;;  %v868_v0 = vmov 0.0   ;;  %v1028_v1 = vld [vmem:[%s194_s23] sm:$0xff]  ;;  %v1030_v2 = vld [vmem:[%s194_s23 + $0x8] sm:$0xff] }
  0x52   : > { %s1024_s4 = sshll.u32 %s226_s22, 3  ;;  %240 = vst [vmem:[#allocation2] sm:$0xff] %v868_v0  ;;  %s1026_s5 = sadd.s32 4096, %s581_s27  ;;  %v1032_v3 = vld [vmem:[%s194_s23 + $0x10] sm:$0xff]  ;;  %v1034_v4 = vld [vmem:[%s194_s23 + $0x18] sm:$0xff]  ;;  %v245_v25 = vld [vmem:[%s1014_s3] sm:$0xff] }
  0x53   : > { %v254_v5 = vand.u32 2147483647, %v1028_v1  ;;  %v255_v6 = vand.u32 2147483647, %v1030_v2  ;;  %v256_v7 = vand.u32 2147483647, %v1032_v3  ;;  %v246_v26 = vunpack.c.0.s8 %v245_v25 }
  0x54   : > { %v257_v8 = vand.u32 2147483647, %v1034_v4  ;;  %v247_v27 = vunpack.c.1.s8 %v245_v25  ;;  %v248_v28 = vunpack.c.2.s8 %v245_v25  ;;  %v249_v29 = vunpack.c.3.s8 %v245_v25  ;;  %s228_s21 = scalar_lea.vmem [#allocation8], %s1024_s4  ;;  %p573_p2 = scmp.gt.s32.totalorder %s1026_s5, 2048 }
  0x55   : > { %v258_v9 = vsub.f32 0.0, %v254_v5  ;;  %v259_v10 = vsub.f32 0.0, %v255_v6  ;;  %v260_v11 = vsub.f32 0.0, %v256_v7  ;;  %v298_v30 = vmax.f32 %v1028_v1, 0.0 }
  0x56   : > { %v261_v12 = vsub.f32 0.0, %v257_v8  ;;  %v1054_v31 = vcvt.s32.f32 %v246_v26  ;;  %v1056_v32 = vcvt.s32.f32 %v247_v27  ;;  %v299_v33 = vmax.f32 %v1030_v2, 0.0 }
  0x57   : > { %v262_v13 = vmul.f32 1.442695, %v258_v9  ;;  %v264_v14 = vmul.f32 1.442695, %v259_v10  ;;  %v266_v15 = vmul.f32 1.442695, %v260_v11  ;;  %v1059_v34 = vcvt.s32.f32 %v248_v28 }
  0x58   : > { %v268_v16 = vmul.f32 1.442695, %v261_v12  ;;  %v300_v35 = vmax.f32 %v1032_v3, 0.0  ;;  %v301_v36 = vmax.f32 %v1034_v4, 0.0  ;;  %v1063_v37 = vcvt.s32.f32 %v249_v29 }
  0x59   : > { %677 = vpow2.f32 %v262_v13  ;;  %v282_v38 = vmin.f32 %v1028_v1, 0.0  ;;  %v283_v39 = vmin.f32 %v1030_v2, 0.0  ;;  %v284_v40 = vmin.f32 %v1032_v3, 0.0 }
  0x5a   : > { %679 = vpow2.f32 %v264_v14  ;;  %v302_v41 = vsub.f32 0.0, %v298_v30  ;;  %v285_v43 = vmin.f32 %v1034_v4, 0.0  ;;  %v303_v44 = vsub.f32 0.0, %v299_v33 }
  0x5b   : > { %681 = vpow2.f32 %v266_v15  ;;  %v322_v45 = vsub.f32 1.0, %v1054_v31  ;;  %v323_v46 = vsub.f32 1.0, %v1056_v32  ;;  %v304_v49 = vsub.f32 0.0, %v300_v35 }
  0x5c   : > { %683 = vpow2.f32 %v268_v16  ;;  %v305_v50 = vsub.f32 0.0, %v301_v36  ;;  %v324_v51 = vsub.f32 1.0, %v1059_v34  ;;  %v325_v54 = vsub.f32 1.0, %v1063_v37 }
  0x5d   : > { %vm346_vm0 = vcmp.ge.f32.partialorder %v1028_v1, 0.0  ;;  %vm347_vm1 = vcmp.ge.f32.partialorder %v1030_v2, 0.0  ;;  %vm348_vm2 = vcmp.ge.f32.partialorder %v1032_v3, 0.0  ;;  %vm349_vm3 = vcmp.ge.f32.partialorder %v1034_v4, 0.0 }
  0x5e   : > { %vm366_vm4 = vcmp.eq.f32.partialorder %v1054_v31, 1.0  ;;  %vm367_vm5 = vcmp.eq.f32.partialorder %v1056_v32, 1.0  ;;  %vm368_vm6 = vcmp.eq.f32.partialorder %v1059_v34, 1.0  ;;  %vm369_vm7 = vcmp.eq.f32.partialorder %v1063_v37, 1.0 }
  0x66   : > { %v1040_v17 = vpop.eup %677 }
  0x67   : > { %v1042_v18 = vpop.eup %679  ;;  %v270_v19 = vadd.f32 1.0, %v1040_v17 }
  0x68   : > { %v1045_v20 = vpop.eup %681  ;;  %v271_v21 = vadd.f32 1.0, %v1042_v18 }
  0x69   : > { %v1048_v22 = vpop.eup %683  ;;  %v272_v23 = vadd.f32 1.0, %v1045_v20  ;;  %685 = vlog2.f32 %v270_v19 }
  0x6a   : > { %v273_v24 = vadd.f32 1.0, %v1048_v22  ;;  %687 = vlog2.f32 %v271_v21 }
  0x6b   : > { %689 = vlog2.f32 %v272_v23 }
  0x6c   : > { %691 = vlog2.f32 %v273_v24 }
  0x6d   : > { %693 = vrcp.f32 %v270_v19 }
  0x6e   : > { %695 = vrcp.f32 %v271_v21 }
  0x6f   : > { %697 = vrcp.f32 %v272_v23 }
  0x70   : > { %699 = vrcp.f32 %v273_v24 }
  0x76   : > { %v686_v42 = vpop.eup %685 }
  0x77   : > { %v688_v47 = vpop.eup %687  ;;  %v275_v48 = vmul.f32 0.6931472, %v686_v42 }
  0x78   : > { %v690_v52 = vpop.eup %689  ;;  %v277_v53 = vmul.f32 0.6931472, %v688_v47 }
  0x79   : > { %v692_v55 = vpop.eup %691  ;;  %v279_v56 = vmul.f32 0.6931472, %v690_v52  ;;  %v286_v57 = vsub.f32 %v282_v38, %v275_v48  ;;  %v306_v58 = vsub.f32 %v302_v41, %v275_v48 }
  0x7a   : > { %v281_v59 = vmul.f32 0.6931472, %v692_v55  ;;  %v287_v60 = vsub.f32 %v283_v39, %v277_v53  ;;  %v307_v61 = vsub.f32 %v303_v44, %v277_v53  ;;  %v694_v62 = vpop.eup %693 }
  0x7b   : > { %v288_v63 = vsub.f32 %v284_v40, %v279_v56  ;;  %v290_v0 = vmax.f32 %v286_v57, -13.815511  ;;  %v308_v5 = vsub.f32 %v304_v49, %v279_v56  ;;  %v310_v6 = vmax.f32 %v306_v58, -13.802319  ;;  %v696_v7 = vpop.eup %695 }
  0x7c   : > { %v289_v8 = vsub.f32 %v285_v43, %v281_v59  ;;  %v291_v9 = vmax.f32 %v287_v60, -13.815511  ;;  %v309_v10 = vsub.f32 %v305_v50, %v281_v59  ;;  %v311_v11 = vmax.f32 %v307_v61, -13.802319  ;;  %v698_v15 = vpop.eup %697 }
  0x7d   : > { %v292_v12 = vmax.f32 %v288_v63, -13.815511  ;;  %v294_v13 = vmin.f32 %v290_v0, -1.0132794e-06  ;;  %v312_v14 = vmax.f32 %v308_v5, -13.802319  ;;  %v350_v23 = vmul.f32 %v694_v62, %v1040_v17  ;;  %v700_v24 = vpop.eup %699 }
  0x7e   : > { %v293_v16 = vmax.f32 %v289_v8, -13.815511  ;;  %v295_v19 = vmin.f32 %v291_v9, -1.0132794e-06  ;;  %v313_v21 = vmax.f32 %v309_v10, -13.802319  ;;  %v351_v28 = vmul.f32 %v696_v7, %v1042_v18 }
  0x7f   : > { %v296_v25 = vmin.f32 %v292_v12, -1.0132794e-06  ;;  %v314_v26 = vmin.f32 %v310_v6, -1.0132794e-06  ;;  %v315_v27 = vmin.f32 %v311_v11, -1.0132794e-06  ;;  %v318_v35 = vmul.f32 %v294_v13, %v1054_v31 }
  0x80   : > { %v297_v29 = vmin.f32 %v293_v16, -1.0132794e-06  ;;  %v316_v30 = vmin.f32 %v312_v14, -1.0132794e-06  ;;  %v317_v33 = vmin.f32 %v313_v21, -1.0132794e-06  ;;  %v319_v36 = vmul.f32 %v295_v19, %v1056_v32 }
  0x81   : > { %v320_v38 = vmul.f32 %v296_v25, %v1059_v34  ;;  %v352_v39 = vmul.f32 %v698_v15, %v1045_v20  ;;  %v326_v17 = vmul.f32 %v322_v45, %v314_v26  ;;  %v327_v41 = vmul.f32 %v323_v46, %v315_v27 }
  0x82   : > { %v321_v40 = vmul.f32 %v297_v29, %v1063_v37  ;;  %v353_v42 = vmul.f32 %v700_v24, %v1048_v22  ;;  %v328_v43 = vmul.f32 %v324_v51, %v316_v30  ;;  %v329_v44 = vmul.f32 %v325_v54, %v317_v33 }
  0x83   : > { %v354_v18 = vsel %vm346_vm0, %v694_v62, %v350_v23  ;;  %v355_v47 = vsel %vm347_vm1, %v696_v7, %v351_v28  ;;  %v356_v48 = vsel %vm348_vm2, %v698_v15, %v352_v39  ;;  %v330_v45 = vadd.f32 %v326_v17, %v318_v35 }
  0x84   : > { %v357_v20 = vsel %vm349_vm3, %v700_v24, %v353_v42  ;;  %v358_v49 = vmax.f32 %v354_v18, 1e-06  ;;  %v359_v50 = vmax.f32 %v355_v47, 1e-06  ;;  %v331_v46 = vadd.f32 %v327_v41, %v319_v36 }
  0x85   : > { %v360_v52 = vmax.f32 %v356_v48, 1e-06  ;;  %v361_v22 = vmax.f32 %v357_v20, 1e-06  ;;  %v332_v51 = vadd.f32 %v328_v43, %v320_v38  ;;  %v333_v53 = vadd.f32 %v329_v44, %v321_v40 }
  0x86   : > { %v362_v54 = vmin.f32 %v358_v49, 0.999999  ;;  %v363_v1 = vmin.f32 %v359_v50, 0.999999  ;;  %v334_v4 = vsub.f32 0.0, %v330_v45  ;;  %v335_v57 = vsub.f32 0.0, %v331_v46 }
  0x87   : > { %v364_v55 = vmin.f32 %v360_v52, 0.999999  ;;  %v365_v56 = vmin.f32 %v361_v22, 0.999999  ;;  %v336_v60 = vsub.f32 0.0, %v332_v51  ;;  %v337_v61 = vsub.f32 0.0, %v333_v53 }
  0x88   : > { %v370_v2 = vsub.f32 1.0, %v362_v54  ;;  %v371_v3 = vsub.f32 1.0, %v363_v1 }
  0x89   : > { %v372_v58 = vsub.f32 1.0, %v364_v55  ;;  %v373_v59 = vsub.f32 1.0, %v365_v56 }
  0x8a   : > { %v374_v62 = vsel %vm366_vm4, %v370_v2, %v362_v54  ;;  %v375_v63 = vsel %vm367_vm5, %v371_v3, %v363_v1  ;;  %392 = sbr.rel (%p573_p2) target bundleno = 152 (0x98), region = 44 }
  0x8b   : > { %v376_v0 = vsel %vm368_vm6, %v372_v58, %v364_v55  ;;  %v377_v5 = vsel %vm369_vm7, %v373_v59, %v365_v56  ;;  %v378_v31 = vmul.f32 %v374_v62, %v374_v62  ;;  %v379_v6 = vmul.f32 %v375_v63, %v375_v63 }
  0x8c   : > { %v380_v32 = vmul.f32 %v376_v0, %v376_v0  ;;  %v381_v7 = vmul.f32 %v377_v5, %v377_v5 }
  0x8d   : > { %v382_v34 = vmul.f32 %v378_v31, %v334_v4  ;;  %v383_v8 = vmul.f32 %v379_v6, %v335_v57 }
  0x8e   : > { %v384_v37 = vmul.f32 %v380_v32, %v336_v60  ;;  %v385_v9 = vmul.f32 %v381_v7, %v337_v61 }
  0x8f   : > { %v394_v10 = vadd.f32 %v383_v8, %v382_v34  ;;  %v393_v12 = vld [vmem:[#allocation2] sm:$0xff] }
  0x91   : > { %v395_v11 = vadd.f32 %v394_v10, %v384_v37 }
  0x93   : > { %v396_v13 = vadd.f32 %v395_v11, %v385_v9 }
  0x95   : > { %v397_v14 = vadd.f32 %v396_v13, %v393_v12 }
  0x97   : > { %398 = vst [vmem:[#allocation2] sm:$0xff] %v397_v14 }
  0x98 PF: > { %p574_p4 = scmp.le.s32.totalorder %s1026_s5, 2048 }
  0x99   : > { %s575_s6 = sshll.u32 (!%p574_p4), %s854_s14, 5 }
  0x9a   : > { %402 = sbr.rel (%p574_p4) target bundleno = 182 (0xb6), region = 48 }
  0x9f   : > { %v403_v15 = vlaneseq  ;;  %v411_v16 = vstv %s575_s6  ;;  %v432_v48 = vld [vmem:[#allocation2] sm:$0xff] }
  0xa1   : > { %v404_v19 = vshrl.u32 %v403_v15, 7  ;;  %v409_v21 = vand.u32 127, %v403_v15 }
  0xa3   : > { %v405_v23 = vadd.s32 8, %v404_v19  ;;  %v406_v24 = vadd.s32 16, %v404_v19  ;;  %v407_v25 = vadd.s32 24, %v404_v19  ;;  %v412_v26 = vadd.s32 %v411_v16, %v404_v19 }
  0xa5   : > { %v413_v27 = vadd.s32 %v411_v16, %v405_v23  ;;  %v414_v28 = vadd.s32 %v411_v16, %v406_v24  ;;  %v415_v29 = vadd.s32 %v411_v16, %v407_v25  ;;  %v416_v30 = vmul.u32 128, %v412_v26 }
  0xa7   : > { %v417_v33 = vmul.u32 128, %v413_v27  ;;  %v418_v35 = vmul.u32 128, %v414_v28  ;;  %v420_v36 = vadd.s32 %v416_v30, %v409_v21 }
  0xa8   : > { %v419_v38 = vmul.u32 128, %v415_v29 }
  0xa9   : > { %v421_v39 = vadd.s32 %v417_v33, %v409_v21  ;;  %v422_v40 = vadd.s32 %v418_v35, %v409_v21  ;;  %vm424_vm8 = vcmp.lt.s32.totalorder %v420_v36, 2048 }
  0xaa   : > { %v423_v17 = vadd.s32 %v419_v38, %v409_v21  ;;  %v428_v41 = vsel %vm424_vm8, %v382_v34, 0.0 }
  0xab   : > { %vm425_vm9 = vcmp.lt.s32.totalorder %v421_v39, 2048  ;;  %vm426_vm10 = vcmp.lt.s32.totalorder %v422_v40, 2048 }
  0xac   : > { %vm427_vm11 = vcmp.lt.s32.totalorder %v423_v17, 2048  ;;  %v429_v42 = vsel %vm425_vm9, %v383_v8, 0.0  ;;  %v430_v43 = vsel %vm426_vm10, %v384_v37, 0.0 }
  0xad   : > { %v433_v44 = vadd.f32 %v429_v42, %v428_v41  ;;  %v431_v18 = vsel %vm427_vm11, %v385_v9, 0.0 }
  0xaf   : > { %v434_v47 = vadd.f32 %v433_v44, %v430_v43 }
  0xb1   : > { %v435_v20 = vadd.f32 %v434_v47, %v431_v18 }
  0xb3   : > { %v436_v49 = vadd.f32 %v435_v20, %v432_v48 }
  0xb5   : > { %437 = vst [vmem:[#allocation2] sm:$0xff] %v436_v49 }
  0xb6 PF: > { %s577_s28 = sshll.u32 %s854_s14, 7  ;;  %s458_s17 = sshll.u32 %s228_s21, 4  ;;  %s459_s17 = int_to_ptr.vmem [resolvable:$true] %s458_s17 }
  0xb7   : > { %s1105_s12 = scalar_lea.hbm %s1159_s2, %s577_s28  ;;  %s445_s18 = scalar_lea.sflag [#allocation5], %s226_s22 }
  0xb8   : > { %s757_s20 = scalar_lea.vmem %s459_s17, 128  ;;  %p1170_p13 = scmp.ne.s32.totalorder %s1164_s25, 0 }
  0xb9   : > { %p758_p12 = scmp.ne.s32.totalorder %s459_s17, %s757_s20  ;;  %s869_s23 = smov [#allocation8]  }
  0xba   : > { %s761_s14 = sshll.u32 %s869_s23, 4  ;;  %s762_s14 = int_to_ptr.vmem [resolvable:$false] %s761_s14 }
  0xbb   : > { %p759_p0 = pnand %p758_p12, %p1170_p13  ;;  %s763_s29 = scalar_lea.vmem %s762_s14, 256 }
  0xbc   : > { %v441_v50 = vld [vmem:[#allocation2] sm:$0xff]  ;;  %p764_p9 = scmp.lt.s32.totalorder %s459_s17, %s762_s14  ;;  %p765_p10 = scmp.lt.s32.totalorder %s763_s29, %s757_s20 }
  0xbd   : > { %v442_v45 = vmul.f32 0.000390625, %v441_v50  ;;  %p760_p8 = pneg %p759_p0 }
  0xbe   : > { %p766_p11 = por %p765_p10, %p764_p9 }
  0xbf   : > { %443 = vst [vmem:[%s228_s21] sm:$0xff] %v442_v45 }
  0xc0   : > { %p767_p1 = pnand %p766_p11, %p760_p8 }
  0xc2   : > { %770 = shalt.err (!%p767_p1)
}
  0xc3   : > { %s771_s30 = scalar_lea.hbm %s1105_s12, 128  ;;  %s775_s27 = scalar_lea.hbm %s1159_s2, 256 }
  0xc4   : > { %p772_p3 = scmp.ne.s32.totalorder %s1105_s12, %s771_s30  ;;  %p776_p5 = scmp.lt.s32.totalorder %s1105_s12, %s1159_s2 }
  0xc5   : > { %p777_p2 = scmp.lt.s32.totalorder %s775_s27, %s771_s30 }
  0xc6   : > { %p773_p7 = pnand %p772_p3, %p1170_p13 }
  0xc7   : > { %p778_p4 = por %p777_p2, %p776_p5 }
  0xc8   : > { %p774_p6 = pneg %p773_p7 }
  0xca   : > { %p779_p12 = pnand %p778_p4, %p774_p6 }
  0xcc   : > { %782 = shalt.err (!%p779_p12)
}
  0xcd   : > { %587 = dma.vmem_to_hbm [thread:$0]  (%p1170_p13), %s459_s17, 128, %s1105_s12, %s445_s18  }
  0xce PF: > { %s470_s21 = sand.u32 1, %s834_s9   ;;  %p1171_p0 = scmp.ne.s32.totalorder %s1165_s26, 0 }
  0xcf   : > { %p1172_p8 = scmp.ge.s32.totalorder %s862_s16, 2  ;;  %s471_s6 = scalar_lea.sflag [#allocation5], %s470_s21 }
  0xd1   : > { %p597_p9 = pnand %p1172_p8, %p1171_p0 }
  0xd3   : > { %p598_p10 = pneg %p597_p9 }
  0xd5   : > { %828 = dma.done.wait (%p598_p10), %s471_s6, 128  }
  0xd6   : > { %830 = vsyncadd (%p598_p10), %s471_s6, 4294967168  ;;  %s21_s16 = sadd.s32 1, %s862_s16   ;;  %s1173_s9 = smov %s838_s10 }
  0xd7   : > { %p18_p11 = scmp.ge.s32.totalorder %s21_s16, 4   ;;  %s1174_s10 = smov %s842_s11 }
  0xd8   : > { %s1175_s11 = smov %s943_s24  ;;  %s1176_s12 = smov %s850_s13 }
  0xd9   : > { %s1147_s13 = smov 0   ;;  %s1177_s14 = smov %s858_s15 }
  0xda   : > { %s1178_s15 = smov %s1180_s19  ;;  %20 = sbr.rel (!%p18_p11) target bundleno = 9 (0x9), region = 102 }
  0xdf   :  { %476 = vsyncpa [#allocation4], 1 }
  0xe0   :  { %478 = vsyncpa [#allocation4 + $0x1], 1 }
  0xe1   :  { %479 = vsyncpa [#allocation7], 1 }
  0xe2   :  { %481 = vsyncpa [#allocation7 + $0x1], 1 }
  0xe3   :  { %482 = vsyncpa [#allocation5], 1 }
  0xe4   :  { %484 = vsyncpa [#allocation5 + $0x1], 1 }

</bundles_post_ra>
